<compile_context>
chip_gen: v5e
topology: v5e:2x2
jax: 0.10.0
libtpu: 0.0.40
codegen_flags: <defaults>
</compile_context>

<pallas_src>
import functools
import math

import jax
import jax.numpy as jnp
from jax import lax
from jax.experimental import pallas as pl
from jax.experimental.pallas import tpu as pltpu

_LANE = 128
_CHUNK = 8192                    # in-kernel compute-chunk width (lanes)
_TN_CAP = 1 << 18                # 262144-lane cap on the pixel-tile width
_INPUT_VMEM_BUDGET = 24 << 20    # target bytes for double-buffered input tiles
_VMEM_LIMIT = 48 << 20           # explicit scoped-VMEM limit (OK on v5e/v6e/v7x)


def _pick_tiles(C, x_dtype, t_dtype, n_pix, tile_lanes=None, chunk_lanes=None):
    """Choose (pixel-tile width, in-kernel compute-chunk width), in lanes."""
    cp = -(-C // 8) * 8                         # sublane-padded class count
    x_it = jnp.dtype(x_dtype).itemsize
    t_it = jnp.dtype(t_dtype).itemsize
    # Double-buffered VMEM bytes per pixel lane: the cp-sublane logits buffer
    # and the 8-sublane-padded label buffer, two buffers each.
    per_lane = 2 * cp * x_it + 2 * 8 * t_it
    tn = _INPUT_VMEM_BUDGET // per_lane
    tn = int(min(tn, _TN_CAP, n_pix))
    if tile_lanes is not None:
        tn = int(min(tile_lanes, n_pix))
    if n_pix >= _LANE:
        tn = max(_LANE, (tn // _LANE) * _LANE)  # lane-aligned tile
        chunk = _LANE * math.gcd(tn // _LANE, _CHUNK // _LANE)
    else:
        tn = n_pix                              # tiny image: one full-row block
        chunk = tn
    if chunk_lanes is not None:
        assert tn % chunk_lanes == 0, "chunk_lanes must divide the pixel tile"
        chunk = int(chunk_lanes)
    return tn, chunk


def _soft_ce_kernel(x_ref, t_ref, out_ref, *, n_pix, tn, chunk):
    """Grid = (B, num_pixel_tiles); out_ref is this grid point's partial sum."""
    ti = pl.program_id(1)
    c = x_ref.shape[1]
    nchunks = tn // chunk

    # Lanes of this pixel tile that hold real pixels (only the last tile of a
    # batch row can be ragged; interior tiles have valid >= tn).
    valid = jnp.int32(n_pix) - ti * tn

    # Hoisted iotas (JAX does not CSE broadcast_in_dim inside loops).
    lane = lax.broadcasted_iota(jnp.int32, (1, chunk), 1)
    class_ids = lax.broadcasted_iota(jnp.int32, (c, chunk), 0)

    def chunk_sum(logits, labels, nvalid, masked):
        logits = logits.astype(jnp.float32)          # upcast in-kernel
        labels = labels.astype(jnp.int32)
        # Numerically-stable softmax over the class (sublane) axis.
        m = jnp.max(logits, axis=0, keepdims=True)   # (1, chunk)  XLU
        e = jnp.exp(logits - m)                      # (C, chunk)  EUP
        denom = jnp.sum(e, axis=0, keepdims=True)    # (1, chunk)  XLU
        # One-hot pick of the true-class exp (labels outside [0, C) -> 0).
        picked = jnp.sum(jnp.where(labels == class_ids, e, jnp.float32(0.0)),
                         axis=0, keepdims=True)      # (1, chunk)
        prob = picked * pl.reciprocal(denom, approx=True)   # EUP, not a divide
        if masked:
            # Select (not multiply) keeps OOB-garbage Inf/NaN out of the sum.
            prob = jnp.where(lane < nvalid, prob, jnp.float32(0.0))
        return jnp.sum(prob)

    if nchunks == 1:
        # Single-chunk tile: no dynamic lane slicing (also covers tiny /
        # non-128-aligned pixel counts); mask is always applied (cheap here).
        tile_sum = chunk_sum(x_ref[0], t_ref[0], valid, masked=True)
    else:
        # Interior (fully valid) chunks: plain sum, no mask work.
        n_full = jnp.clip(valid // chunk, 0, nchunks)

        def body_full(j, acc):
            off = pl.multiple_of(j * chunk, chunk)
            return acc + chunk_sum(x_ref[0, :, pl.ds(off, chunk)],
                                   t_ref[0, :, pl.ds(off, chunk)],
                                   chunk, masked=False)

        def body_ragged(j, acc):
            off = pl.multiple_of(j * chunk, chunk)
            return acc + chunk_sum(x_ref[0, :, pl.ds(off, chunk)],
                                   t_ref[0, :, pl.ds(off, chunk)],
                                   valid - off, masked=True)

        tile_sum = lax.fori_loop(0, n_full, body_full, jnp.float32(0.0))
        tile_sum = lax.fori_loop(n_full, nchunks, body_ragged, tile_sum)

    out_ref[...] = jnp.full(out_ref.shape, tile_sum, jnp.float32)


def soft_ce_loss_o(inputs, target, n_classes=None, *,
                   tile_lanes=None, chunk_lanes=None):
    """Forward pass of soft_ce_loss_o.

    inputs : (B, C, *spatial) logits (any float dtype; bf16 halves HBM traffic)
    target : (B, *spatial) or (B, 1, *spatial) integer class labels
    """
    B, C = inputs.shape[0], inputs.shape[1]
    if n_classes is not None:
        assert C == n_classes, "predict & n_classes do not match"
    spatial = inputs.shape[2:]
    N = math.prod(spatial)

    t = target
    if t.ndim == inputs.ndim and t.shape[1] == 1:
        t = t[:, 0]
    assert t.shape[0] == B and math.prod(t.shape[1:]) == N, \
        "predict & target shape do not match"

    # Free, contiguous reshapes - no transpose, no pad, no cast pass.
    x = inputs.reshape(B, C, N)
    tgt = t.reshape(B, 1, N)

    tn, chunk = _pick_tiles(C, x.dtype, tgt.dtype, N, tile_lanes, chunk_lanes)
    num_tiles = -(-N // tn)

    kernel = functools.partial(_soft_ce_kernel, n_pix=N, tn=tn, chunk=chunk)

    partials = pl.pallas_call(
        kernel,
        out_shape=jax.ShapeDtypeStruct((B, num_tiles, 1, _LANE), jnp.float32),
        grid=(B, num_tiles),
        in_specs=[
            pl.BlockSpec((1, C, tn), lambda b, i: (b, 0, i)),   # all-class slab
            pl.BlockSpec((1, 1, tn), lambda b, i: (b, 0, i)),   # labels
        ],
        out_specs=pl.BlockSpec((1, 1, 1, _LANE), lambda b, i: (b, i, 0, 0)),
        compiler_params=pltpu.CompilerParams(
            dimension_semantics=("parallel", "parallel"),
            vmem_limit_bytes=_VMEM_LIMIT),
    )(x, tgt)

    # Finalize on the host side of the kernel: sum the per-(batch, tile)
    # partials, negate, and normalize by the pixel count.
    total = jnp.sum(partials[:, :, 0, 0])
    return -total / (B * N)


def _reference_soft_ce_loss(inputs, target, n_classes):
    """Pure-JAX transliteration of the PyTorch module (for verification)."""
    p = jax.nn.softmax(inputs.astype(jnp.float32), axis=1)
    onehot = jnp.stack(
        [(target == i).astype(jnp.float32) for i in range(n_classes)], axis=1)
    loss_vec = -(p * onehot).sum(axis=1)
    return loss_vec.mean()


if __name__ == "__main__":
    key = jax.random.PRNGKey(0)
    k1, k2, k3, k4 = jax.random.split(key, 4)

    # Case 1: canonical small NCHW segmentation batch (single tile / chunk).
    B, C, H, W = 2, 4, 16, 16
    x1 = jax.random.normal(k1, (B, C, H, W), dtype=jnp.float32)
    t1 = jax.random.randint(k2, (B, H, W), 0, C, dtype=jnp.int32)
    loss1 = jax.block_until_ready(soft_ce_loss_o(x1, t1, n_classes=C))
    ref1 = _reference_soft_ce_loss(x1, t1, C)
    assert jnp.allclose(loss1, ref1, rtol=2e-3, atol=1e-5), (loss1, ref1)

    # Case 2: exercises the multi-tile grid, the in-kernel chunk loop and the
    # masked ragged final tile (N=400 pixels, 256-lane tiles, 128-lane chunks).
    B2, C2, H2, W2 = 2, 3, 20, 20
    x2 = jax.random.normal(k3, (B2, C2, H2, W2), dtype=jnp.float32)
    t2 = jax.random.randint(k4, (B2, H2, W2), 0, C2, dtype=jnp.int32)
    loss2 = jax.block_until_ready(
        soft_ce_loss_o(x2, t2, n_classes=C2, tile_lanes=256, chunk_lanes=128))
    ref2 = _reference_soft_ce_loss(x2, t2, C2)
    assert jnp.allclose(loss2, ref2, rtol=2e-3, atol=1e-5), (loss2, ref2)

    print("KERNEL_OK")
</pallas_src>

<mosaic_0001>
module attributes {stable_mosaic.version = 11 : i64} {
  func.func @_soft_ce_kernel(%arg0: i32, %arg1: i32, %arg2: memref<1x4x256xf32, #tpu.memory_space<vmem>>, %arg3: memref<1x1x256xi32, #tpu.memory_space<vmem>>, %arg4: memref<1x1x1x128xf32, #tpu.memory_space<vmem>>) attributes {dimension_semantics = [#tpu.dimension_semantics<parallel>, #tpu.dimension_semantics<parallel>], iteration_bounds = array<i64: 2, 1>, scalar_prefetch = 0 : i64, scratch_operands = 0 : i64, tpu.core_type = #tpu.core_type<tc>, window_params = [{transform_indices = @transform_0, window_bounds = array<i64: 1, 4, 256>}, {transform_indices = @transform_1, window_bounds = array<i64: 1, 1, 256>}, {transform_indices = @transform_2, window_bounds = array<i64: 1, 1, 1, 128>}]} {
    %c256_i32 = arith.constant 256 : i32
    %0 = arith.muli %arg1, %c256_i32 : i32
    %c256_i32_0 = arith.constant 256 : i32
    %1 = arith.subi %c256_i32_0, %0 : i32
    %2 = tpu.iota {dimensions = array<i32: 1>} : vector<1x256xi32>
    %3 = tpu.iota {dimensions = array<i32: 0>} : vector<4x256xi32>
    %c0 = arith.constant 0 : index
    %c0_1 = arith.constant 0 : index
    %c0_2 = arith.constant 0 : index
    %4 = vector.load %arg2[%c0, %c0_1, %c0_2] : memref<1x4x256xf32, #tpu.memory_space<vmem>>, vector<1x4x256xf32>
    %5 = vector.shape_cast %4 : vector<1x4x256xf32> to vector<4x256xf32>
    %c0_3 = arith.constant 0 : index
    %c0_4 = arith.constant 0 : index
    %c0_5 = arith.constant 0 : index
    %6 = vector.load %arg3[%c0_3, %c0_4, %c0_5] : memref<1x1x256xi32, #tpu.memory_space<vmem>>, vector<1x1x256xi32>
    %7 = vector.shape_cast %6 : vector<1x1x256xi32> to vector<1x256xi32>
    %cst = arith.constant dense<0xFF800000> : vector<256xf32>
    %8 = vector.multi_reduction <maximumf>, %5, %cst [0] : vector<4x256xf32> to vector<256xf32>
    %9 = vector.shape_cast %8 : vector<256xf32> to vector<1x256xf32>
    %10 = vector.broadcast %9 : vector<1x256xf32> to vector<4x256xf32>
    %11 = arith.subf %5, %10 : vector<4x256xf32>
    %12 = math.exp %11 : vector<4x256xf32>
    %cst_6 = arith.constant dense<0.000000e+00> : vector<256xf32>
    %13 = vector.multi_reduction <add>, %12, %cst_6 [0] : vector<4x256xf32> to vector<256xf32>
    %14 = vector.shape_cast %13 : vector<256xf32> to vector<1x256xf32>
    %15 = vector.broadcast %7 : vector<1x256xi32> to vector<4x256xi32>
    %16 = arith.cmpi eq, %15, %3 : vector<4x256xi32>
    %cst_7 = arith.constant 0.000000e+00 : f32
    %17 = vector.broadcast %cst_7 : f32 to vector<4x256xf32>
    %18 = arith.select %16, %12, %17 : vector<4x256xi1>, vector<4x256xf32>
    %cst_8 = arith.constant dense<0.000000e+00> : vector<256xf32>
    %19 = vector.multi_reduction <add>, %18, %cst_8 [0] : vector<4x256xf32> to vector<256xf32>
    %20 = vector.shape_cast %19 : vector<256xf32> to vector<1x256xf32>
    %21 = tpu.reciprocal %14 {approx = true} : vector<1x256xf32> -> vector<1x256xf32>
    %22 = arith.mulf %20, %21 : vector<1x256xf32>
    %23 = vector.broadcast %1 : i32 to vector<1x256xi32>
    %24 = arith.cmpi slt, %2, %23 : vector<1x256xi32>
    %cst_9 = arith.constant 0.000000e+00 : f32
    %25 = vector.broadcast %cst_9 : f32 to vector<1x256xf32>
    %26 = arith.select %24, %22, %25 : vector<1x256xi1>, vector<1x256xf32>
    %27 = vector.shape_cast %26 : vector<1x256xf32> to vector<1x1x256xf32>
    %cst_10 = arith.constant dense<0.000000e+00> : vector<1xf32>
    %28 = vector.multi_reduction <add>, %27, %cst_10 [1, 2] : vector<1x1x256xf32> to vector<1xf32>
    %29 = vector.shape_cast %28 : vector<1xf32> to vector<1x1x1xf32>
    %30 = vector.extract %29[0, 0, 0] : f32 from vector<1x1x1xf32>
    %31 = vector.broadcast %30 : f32 to vector<1x1x1x128xf32>
    %c0_11 = arith.constant 0 : index
    %c0_12 = arith.constant 0 : index
    %c0_13 = arith.constant 0 : index
    %c0_14 = arith.constant 0 : index
    %32 = vector.load %arg4[%c0_11, %c0_12, %c0_13, %c0_14] : memref<1x1x1x128xf32, #tpu.memory_space<vmem>>, vector<1x1x1x128xf32>
    tpu.vector_store %arg4[%c0_11, %c0_12, %c0_13, %c0_14], %31 {strides = array<i32>} : memref<1x1x1x128xf32, #tpu.memory_space<vmem>>, vector<1x1x1x128xf32>,
    return
  }
  func.func @transform_0(%arg0: i32, %arg1: i32) -> (i32, i32, i32) {
    %c0_i32 = arith.constant 0 : i32
    %c0_i32_0 = arith.constant 0 : i32
    return %arg0, %c0_i32, %arg1 : i32, i32, i32
  }
  func.func @transform_1(%arg0: i32, %arg1: i32) -> (i32, i32, i32) {
    %c0_i32 = arith.constant 0 : i32
    %c0_i32_0 = arith.constant 0 : i32
    return %arg0, %c0_i32, %arg1 : i32, i32, i32
  }
  func.func @transform_2(%arg0: i32, %arg1: i32) -> (i32, i32, i32, i32) {
    %c0_i32 = arith.constant 0 : i32
    %c0_i32_0 = arith.constant 0 : i32
    %c0_i32_1 = arith.constant 0 : i32
    return %arg0, %arg1, %c0_i32, %c0_i32_0 : i32, i32, i32, i32
  }
}

</mosaic_0001>

<bundles_post_ra>
// kernel: tpu_custom_call.1
= control target key start
LH: loop header
LB: loop body
LE: loop exit
PB: predicated region body
PF: predicated region fallthrough
CT: control target
= control target key end

     0   :  { %7 = vsyncpa [#allocation3], 0  ;;  %s847_s0 = inlined_call_operand.hbm [shape: f32[2,4,256], index: 0, kind: input, shape index: {}]   ;;  %s848_s1 = inlined_call_operand.hbm [shape: s32[2,1,256], index: 1, kind: input, shape index: {}]   ;;  %s849_s2 = inlined_call_operand.hbm [shape: f32[2,1,1,128], index: 2, kind: output, shape index: {}]  }
   0x1   :  { %9 = vsyncpa [#allocation3 + $0x1], 0 }
   0x2   :  { %10 = vsyncpa [#allocation6], 0 }
   0x3   :  { %12 = vsyncpa [#allocation6 + $0x1], 0 }
   0x4   :  { %13 = vsyncpa [#allocation4], 0 }
   0x5   :  { %15 = vsyncpa [#allocation4 + $0x1], 0  ;;  %s701_s9 = smov 0   ;;  %s703_s10 = smov 0  }
   0x6   :  { %s705_s11 = smov 0   ;;  %s707_s12 = smov 0  }
   0x7   :  { %s709_s13 = smov 0   ;;  %s711_s14 = smov 0  }
   0x8 LB: > { %s448_s15 = sadd.s32 4294967295, %s684_s14   ;;  %s449_s16 = sadd.s32 4294967294, %s684_s14   ;;  %s684_s14 = sphi %s711_s14, %s21_s14   ;;  %s680_s13 = sphi %s709_s13, %s859_s13   ;;  %s676_s12 = sphi %s707_s12, %s858_s12   ;;  %s672_s11 = sphi %s705_s11, %s857_s11   ;;  %s668_s10 = sphi %s703_s10, %s856_s10   ;;  %s664_s9 = sphi %s701_s9, %s855_s9  }
   0x9   : > { %s33_s17 = sadd.s32 1, %s680_s13  ;;  %s42_s18 = sadd.s32 1, %s672_s11 }
   0xa   : > { %p35_p0 = scmp.ge.s32.totalorder %s33_s17, 2  ;;  %p49_p1 = scmp.ne.s32.totalorder %s672_s11, %s668_s10 }
   0xb   : > { %p50_p2 = scmp.eq.s32.totalorder %s684_s14, 0  ;;  %p55_p3 = scmp.ne.s32.totalorder %s668_s10, %s664_s9 }
   0xc   : > { %s861_s17 = smov (%p35_p0, %s33_s17), 0  ;;  %p56_p5 = scmp.eq.s32.totalorder %s448_s15, 0 }
   0xd   : > { %p742_p4 = por %p50_p2, %p49_p1  ;;  %s37_s20 = ssub.s32 %s680_s13, %s861_s17 }
   0xe   : > { %p109_p6 = scmp.eq.s32.totalorder %s448_s15, 1  ;;  %p40_p7 = scmp.eq.s32.totalorder %s37_s20, 0 }
   0xf   : > { %p748_p8 = por %p56_p5, %p55_p3  ;;  %p115_p10 = scmp.eq.s32.totalorder %s449_s16, 1 }
  0x10   : > { %p752_p9 = por %p109_p6, %p49_p1  ;;  %p451_p12 = scmp.ge.s32.totalorder %s684_s14, 2 }
  0x11   : > { %s757_s23 = scalar_select %p40_p7, %s672_s11, %s42_s18  }
  0x12   : > { %p759_p11 = por %p115_p10, %p55_p3  ;;  %p482_p13 = scmp.lt.s32.totalorder %s684_s14, 2 }
  0x13   : > { %s135_s25 = sand.u32 1, %s672_s11   ;;  %s462_s27 = sshll.u32 %s680_s13, 3 }
  0x14   : > { %s452_s26 = sshll.u32 %s135_s25, 3  ;;  %s146_s30 = scalar_lea.hbm %s847_s0, %s462_s27 }
  0x15   : > { %s139_s3 = scalar_lea.vmem [#allocation2], %s452_s26  ;;  %s148_s5 = sshll.u32 %s146_s30, 4  ;;  %s149_s5 = int_to_ptr.hbm [resolvable:$true] %s148_s5 }
  0x16   : > { %s150_s4 = sshll.u32 %s139_s3, 4  ;;  %p772_p0 = pnand %p482_p13, %p742_p4  ;;  %s151_s4 = int_to_ptr.vmem [resolvable:$true] %s150_s4 }
  0x17   : > { %p457_p1 = scmp.ge.s32.totalorder %s684_s14, 1  ;;  %p176_p2 = scmp.lt.s32.totalorder %s684_s14, 3 }
  0x18   : > { %s136_s7 = scalar_lea.sflag [#allocation3], %s135_s25  ;;  %s455_s8 = sshll.u32 %s135_s25, 1 }
  0x19   : > { %474 = dma.hbm_to_vmem [thread:$0]  (!%p772_p0), %s149_s5, 128, %s151_s4, %s136_s7  }
  0x1a   : > { %p177_p3 = pnand %p457_p1, %p176_p2  ;;  %s456_s15 = sshll.u32 %s680_s13, 1 }
  0x1b   : > { %s167_s20 = scalar_lea.hbm %s848_s1, %s456_s15  ;;  %s161_s26 = scalar_lea.vmem [#allocation5], %s455_s8 }
  0x1c   : > { %s171_s19 = sshll.u32 %s161_s26, 4  ;;  %s169_s27 = sshll.u32 %s167_s20, 4  ;;  %s172_s19 = int_to_ptr.vmem [resolvable:$true] %s171_s19  ;;  %s170_s27 = int_to_ptr.hbm [resolvable:$true] %s169_s27 }
  0x1d   : > { %s158_s28 = scalar_lea.sflag [#allocation6], %s135_s25  ;;  %180 = sbr.rel (%p177_p3) target bundleno = 291 (0x123), region = 28 }
  0x1e   : > { %477 = dma.hbm_to_vmem [thread:$0]  (!%p772_p0), %s170_s27, 32, %s172_s19, %s158_s28  }
  0x1f   : > { %s787_s29 = sand.u32 (!%p177_p3), 1, %s668_s10  }
  0x20   : > { %s458_s30 = sshll.u32 (!%p177_p3), %s787_s29, 3  ;;  %s183_s3 = scalar_lea.sflag (!%p177_p3), [#allocation3], %s787_s29 }
  0x21   : > { %s186_s4 = scalar_lea.vmem (!%p177_p3), [#allocation2], %s458_s30 }
  0x22   : > { %651 = dma.done.wait (%p748_p8), %s183_s3, 128  }
  0x23   : > { %653 = vsyncadd (%p748_p8), %s183_s3, 4294967168  ;;  %s459_s25 = sshll.u32 %s787_s29, 1  ;;  %s193_s5 = scalar_lea.sflag [#allocation6], %s787_s29 }
  0x24   : > { %s196_s6 = scalar_lea.vmem [#allocation5], %s459_s25 }
  0x25   : > { %655 = dma.done.wait (%p748_p8), %s193_s5, 32  }
  0x26   : > { %657 = vsyncadd (%p748_p8), %s193_s5, 4294967264  ;;  %v231_v0 = vld [vmem:[%s186_s4] sm:$0xff]  ;;  %vm239_vm0 = vcmask 1043456   ;;  %v229_v22 = vlaneseq  ;;  %v232_v23 = vld [vmem:[%s196_s6] sm:$0x3]  ;;  %vm316_vm3 = vcmask 1040384   ;;  %s341_s8 = scalar_lea.hbm %s849_s2, %s676_s12 }
  0x27   : > { %234 = vst [vmem:[#allocation1] ss:$2 sm:$0xff] %v231_v0  ;;  %v282_v31 = vperm.slane %v232_v23, 0  ;;  %v283_v32 = vperm.slane %v232_v23, 1  ;;  %s221_s15 = scalar_lea.vmem [#allocation7], %s787_s29  ;;  %s345_s18 = sshll.u32 %s341_s8, 4  ;;  %s346_s18 = int_to_ptr.hbm [resolvable:$true] %s345_s18 }
  0x28   : > { %v230_v26 = vshrl.u32 %v229_v22, 7  ;;  %s343_s16 = sshll.u32 %s221_s15, 4  ;;  %s332_s26 = scalar_lea.sflag [#allocation4], %s787_s29  ;;  %s344_s16 = int_to_ptr.vmem [resolvable:$true] %s343_s16 }
  0x29   : > { %s612_s19 = sshra.s32 %s346_s18, 4  ;;  %s618_s12 = scalar_lea.hbm %s849_s2, 2  ;;  %s613_s19 = int_to_ptr.hbm [resolvable:$true] %s612_s19 }
  0x2a   : > { %vm284_vm1 = vcmp.eq.s32.totalorder %v282_v31, %v230_v26  ;;  %vm285_vm2 = vcmp.eq.s32.totalorder %v283_v32, %v230_v26  ;;  %s614_s27 = scalar_lea.hbm %s613_s19, 1  ;;  %p619_p7 = scmp.lt.s32.totalorder %s613_s19, %s849_s2 }
  0x2b   : > { %p615_p4 = scmp.ne.s32.totalorder %s613_s19, %s614_s27  ;;  %p620_p8 = scmp.lt.s32.totalorder %s618_s12, %s614_s27 }
  0x2d   : > { %p616_p5 = pnand %p615_p4, %p752_p9  ;;  %p621_p10 = por %p620_p8, %p619_p7 }
  0x2e   : > { %v235_v1 = vld.sshfl [vmem:[#allocation1] sm:$0xff pattern:$0x75316420]  ;;  %v236_v2 = vld.sshfl [vmem:[#allocation1 + $0x8] sm:$0xff pattern:$0x75316420] }
  0x2f   : > { %v240_v3 = vsel %vm239_vm0, %v235_v1, -inf  ;;  %v247_v4 = vsel %vm239_vm0, %v236_v2, -inf  ;;  %p617_p6 = pneg %p616_p5 }
  0x30   : > { %v241_v5 = vrot.slane %v240_v3, 4  ;;  %v248_v6 = vrot.slane %v247_v4, 4 }
  0x31   : > { %p622_p13 = pnand %p621_p10, %p617_p6 }
  0x32   : > { %v242_v7 = vmax.f32 %v240_v3, %v241_v5  ;;  %v249_v8 = vmax.f32 %v247_v4, %v248_v6 }
  0x34   : > { %v243_v9 = vrot.slane %v242_v7, 2  ;;  %v250_v10 = vrot.slane %v249_v8, 2 }
  0x36   : > { %v244_v11 = vmax.f32 %v242_v7, %v243_v9  ;;  %v251_v12 = vmax.f32 %v249_v8, %v250_v10 }
  0x38   : > { %v245_v13 = vrot.slane %v244_v11, 1  ;;  %v252_v14 = vrot.slane %v251_v12, 1 }
  0x3a   : > { %v246_v15 = vmax.f32 %v244_v11, %v245_v13  ;;  %v253_v16 = vmax.f32 %v251_v12, %v252_v14 }
  0x3c   : > { %v256_v17 = vrot.slane %v253_v16, 4 }
  0x3e   : > { %v257_v18 = vsel %vm239_vm0, %v246_v15, %v256_v17 }
  0x3f   : > { %v259_v19 = vsub.f32 %v231_v0, %v257_v18 }
  0x41   : > { %v260_v20 = vmul.f32 1.442695, %v259_v19 }
  0x43   : > { %532 = vpow2.f32 %v260_v20 }
  0x49   : > { %v533_v21 = vpop.eup %532 }
  0x4a   : > { %263 = vst [vmem:[#allocation1] ss:$2 sm:$0xff] %v533_v21 }
  0x51   : > { %v264_v24 = vld.sshfl [vmem:[#allocation1] sm:$0xff pattern:$0x75316420]  ;;  %v265_v25 = vld.sshfl [vmem:[#allocation1 + $0x8] sm:$0xff pattern:$0x75316420] }
  0x52   : > { %v268_v27 = vsel %vm239_vm0, %v264_v24, 0.0  ;;  %v275_v28 = vsel %vm239_vm0, %v265_v25, 0.0  ;;  %286 = vst [vmem:[#allocation1] ss:$2 sm:$0xff] %v533_v21 }
  0x53   : > { %v269_v29 = vrot.slane %v268_v27, 4  ;;  %v276_v30 = vrot.slane %v275_v28, 4 }
  0x55   : > { %v270_v33 = vadd.f32 %v269_v29, %v268_v27  ;;  %v277_v34 = vadd.f32 %v276_v30, %v275_v28 }
  0x57   : > { %v271_v35 = vrot.slane %v270_v33, 2  ;;  %v278_v36 = vrot.slane %v277_v34, 2 }
  0x59   : > { %v272_v37 = vadd.f32 %v271_v35, %v270_v33  ;;  %v279_v38 = vadd.f32 %v278_v36, %v277_v34  ;;  %v287_v39 = vld.sshfl [vmem:[#allocation1] sm:$0xff pattern:$0x75316420]  ;;  %v288_v40 = vld.sshfl [vmem:[#allocation1 + $0x8] sm:$0xff pattern:$0x75316420] }
  0x5a   : > { %v291_v41 = vsel %vm284_vm1, %v287_v39, 0.0  ;;  %v292_v42 = vsel %vm285_vm2, %v288_v40, 0.0 }
  0x5b   : > { %v273_v43 = vrot.slane %v272_v37, 1  ;;  %v280_v44 = vrot.slane %v279_v38, 1  ;;  %v293_v45 = vsel %vm239_vm0, %v291_v41, 0.0  ;;  %v300_v46 = vsel %vm239_vm0, %v292_v42, 0.0 }
  0x5c   : > { %v294_v47 = vrot.slane %v293_v45, 4  ;;  %v301_v48 = vrot.slane %v300_v46, 4 }
  0x5d   : > { %v274_v49 = vadd.f32 %v273_v43, %v272_v37  ;;  %v281_v50 = vadd.f32 %v280_v44, %v279_v38 }
  0x5e   : > { %v295_v51 = vadd.f32 %v294_v47, %v293_v45  ;;  %v302_v52 = vadd.f32 %v301_v48, %v300_v46 }
  0x5f   : > { %534 = vrcp.f32 %v274_v49 }
  0x60   : > { %v296_v53 = vrot.slane %v295_v51, 2  ;;  %v303_v54 = vrot.slane %v302_v52, 2  ;;  %536 = vrcp.f32 %v281_v50 }
  0x62   : > { %v297_v55 = vadd.f32 %v296_v53, %v295_v51  ;;  %v304_v56 = vadd.f32 %v303_v54, %v302_v52 }
  0x64   : > { %v298_v57 = vrot.slane %v297_v55, 1  ;;  %v305_v58 = vrot.slane %v304_v56, 1 }
  0x65   : > { %v535_v59 = vpop.eup %534 }
  0x66   : > { %v537_v60 = vpop.eup %536  ;;  %v299_v61 = vadd.f32 %v298_v57, %v297_v55  ;;  %v306_v62 = vadd.f32 %v305_v58, %v304_v56 }
  0x68   : > { %v309_v63 = vmul.f32 %v535_v59, %v299_v61  ;;  %v310_v0 = vmul.f32 %v537_v60, %v306_v62 }
  0x6a   : > { %v317_v1 = vsel %vm316_vm3, %v309_v63, 0.0  ;;  %v318_v2 = vsel %vm316_vm3, %v310_v0, 0.0 }
  0x6b   : > { %v319_v3 = vadd.f32 %v318_v2, %v317_v1 }
  0x6d   : > { %320 = vadd.xlane.f32.xlu0 %v319_v3 }
  0xe0   : > { %v321_v4 = vpop.xlane.xlu0 %320 }
  0xe1   : > { %v322_v5 = vrot.slane %v321_v4, 4 }
  0xe3   : > { %v323_v6 = vadd.f32 %v322_v5, %v321_v4 }
  0xe5   : > { %v324_v7 = vrot.slane %v323_v6, 2 }
  0xe7   : > { %v325_v8 = vadd.f32 %v324_v7, %v323_v6 }
  0xe9   : > { %v326_v9 = vrot.slane %v325_v8, 1 }
  0xeb   : > { %v327_v10 = vadd.f32 %v326_v9, %v325_v8 }
  0xed   : > { %463 = vpush %v327_v10 }
 0x11e   : > { %s464_s20 = spop %463 }
 0x11f   : > { %v329_v11 = vstv %s464_s20 }
 0x120   : > { %330 = vst [vmem:[%s221_s15] sm:$0x1] %v329_v11 }
 0x121   : > { %625 = shalt.err (!%p622_p13)
}
 0x122   : > { %469 = dma.vmem_to_hbm [thread:$0]  (%p752_p9), %s344_s16, 16, %s346_s18, %s332_s26  }
 0x123 PF: > { %s357_s29 = sand.u32 1, %s664_s9   ;;  %p479_p0 = pnand %p451_p12, %p759_p11 }
 0x124   : > { %s358_s25 = scalar_lea.sflag [#allocation4], %s357_s29 }
 0x125   : > { %p480_p1 = pneg %p479_p0 }
 0x127   : > { %659 = dma.done.wait (%p480_p1), %s358_s25, 16  }
 0x128   : > { %661 = vsyncadd (%p480_p1), %s358_s25, 4294967280  ;;  %s21_s14 = sadd.s32 1, %s684_s14   ;;  %s855_s9 = smov %s668_s10 }
 0x129   : > { %p18_p2 = scmp.ge.s32.totalorder %s21_s14, 4   ;;  %s856_s10 = smov %s672_s11 }
 0x12a   : > { %s857_s11 = smov %s757_s23  ;;  %s858_s12 = smov %s680_s13 }
 0x12b   : > { %s859_s13 = smov %s861_s17  ;;  %20 = sbr.rel (!%p18_p2) target bundleno = 8 (0x8), region = 86 }
 0x130   :  { %363 = vsyncpa [#allocation3], 1 }
 0x131   :  { %365 = vsyncpa [#allocation3 + $0x1], 1 }
 0x132   :  { %366 = vsyncpa [#allocation6], 1 }
 0x133   :  { %368 = vsyncpa [#allocation6 + $0x1], 1 }
 0x134   :  { %369 = vsyncpa [#allocation4], 1 }
 0x135   :  { %371 = vsyncpa [#allocation4 + $0x1], 1 }

</bundles_post_ra>
